<compile_context>
chip_gen: v7x
topology: tpu7x:2x2x1
jax: 0.10.0
libtpu: 0.0.40
codegen_flags: <defaults>
</compile_context>

<pallas_src>
import jax
import jax.numpy as jnp
from jax.experimental import pallas as pl
from jax.experimental.pallas import tpu as pltpu


_SUBLANE = 8                      # f32 sublane width; batch padded to this
_MAX_TM = 4096                    # upper bound on the batch tile
_VMEM_BUDGET = 12 * 1024 * 1024   # stay under v5e's 16 MiB default scoped VMEM


def _round_up(n, m):
    return ((n + m - 1) // m) * m


def _choose_tile(batch, obs_dim, hidden, act_dim):
    """Pick the batch tile from the VMEM budget; keep >=2 grid steps for big batches."""
    b_pad = _round_up(batch, _SUBLANE)
    # Per-row VMEM bytes: double-buffered x (f32) + out (f32) tiles, plus
    # in-kernel intermediates (x bf16, h f32, h bf16).
    per_row = (2 * 4 * obs_dim + 2 * 4 * act_dim
               + 2 * obs_dim + 4 * hidden + 2 * hidden)
    tm_max = max(_SUBLANE,
                 min(_MAX_TM, (_VMEM_BUDGET // per_row) // _SUBLANE * _SUBLANE))
    if b_pad > tm_max:
        tm = tm_max
    elif b_pad >= 2048:
        # Split into >=2 tiles so the "parallel" batch axis can use both
        # TensorCores on v7x (and halves per-TC VMEM pressure).
        tm = _round_up(b_pad // 2, _SUBLANE)
    else:
        tm = b_pad
    b_pad = _round_up(b_pad, tm)
    return tm, b_pad


def mlp_kernel(x_ref, w1_ref, b1_ref, w2_ref, b2_ref, o_ref):
    # Cast x to bf16 in-kernel (cheap VPU op hidden under DMA); f32 stays in HBM.
    x = x_ref[...].astype(jnp.bfloat16)
    # Layer 1: bf16 MXU matmul, f32 accumulation, f32 epilogue (bias + ReLU).
    h = jnp.dot(x, w1_ref[...], preferred_element_type=jnp.float32)
    h = jnp.maximum(h + b1_ref[...], 0.0)
    # Layer 2: cast activations to bf16 for the MXU, accumulate in f32.
    out = jnp.dot(h.astype(jnp.bfloat16), w2_ref[...],
                  preferred_element_type=jnp.float32)
    o_ref[...] = out + b2_ref[...]


def prep_params(w1, b1, w2, b2):
    """One-time parameter prep: bf16 weights (MXU-native), f32 row-vector biases."""
    return (w1.astype(jnp.bfloat16),
            jnp.asarray(b1, jnp.float32).reshape(1, -1),
            w2.astype(jnp.bfloat16),
            jnp.asarray(b2, jnp.float32).reshape(1, -1))


def policy_network_forward(x, w1p, b1p, w2p, b2p):
    """Fused 2-layer MLP forward pass: y = relu(x @ W1 + b1) @ W2 + b2.

    Expects parameters already prepped via `prep_params`.
    """
    batch, obs_dim = x.shape
    hidden = w1p.shape[1]
    act_dim = w2p.shape[1]

    tm, b_pad = _choose_tile(batch, obs_dim, hidden, act_dim)
    grid_m = b_pad // tm

    # Only pad the batch axis (to a multiple of tm); feature dims stay native.
    if b_pad != batch:
        xp = jnp.zeros((b_pad, obs_dim), jnp.float32).at[:batch].set(
            x.astype(jnp.float32))
    else:
        xp = x.astype(jnp.float32)

    flops = 2 * b_pad * (obs_dim * hidden + hidden * act_dim)
    bytes_accessed = (xp.size * 4 + w1p.size * 2 + w2p.size * 2
                      + b1p.size * 4 + b2p.size * 4 + b_pad * act_dim * 4)

    out = pl.pallas_call(
        mlp_kernel,
        out_shape=jax.ShapeDtypeStruct((b_pad, act_dim), jnp.float32),
        grid=(grid_m,),
        in_specs=[
            pl.BlockSpec((tm, obs_dim), lambda i: (i, 0)),      # x tile per step
            pl.BlockSpec((obs_dim, hidden), lambda i: (0, 0)),  # VMEM-resident W1
            pl.BlockSpec((1, hidden), lambda i: (0, 0)),        # resident b1
            pl.BlockSpec((hidden, act_dim), lambda i: (0, 0)),  # resident W2
            pl.BlockSpec((1, act_dim), lambda i: (0, 0)),       # resident b2
        ],
        out_specs=pl.BlockSpec((tm, act_dim), lambda i: (i, 0)),
        compiler_params=pltpu.CompilerParams(
            dimension_semantics=("parallel",)),
        cost_estimate=pl.CostEstimate(
            flops=flops, transcendentals=0, bytes_accessed=bytes_accessed),
    )(xp, w1p, b1p, w2p, b2p)

    return out[:batch] if b_pad != batch else out


def init_params(key, obs_dim, act_dim, hidden=64, dtype=jnp.float32):
    """Deterministic init mimicking nn.Linear's U(-1/sqrt(fan_in), 1/sqrt(fan_in))."""
    k1, k2, k3, k4 = jax.random.split(key, 4)
    bound1 = 1.0 / jnp.sqrt(obs_dim)
    bound2 = 1.0 / jnp.sqrt(hidden)
    w1 = jax.random.uniform(k1, (obs_dim, hidden), dtype, -bound1, bound1)
    b1 = jax.random.uniform(k2, (1, hidden), dtype, -bound1, bound1)
    w2 = jax.random.uniform(k3, (hidden, act_dim), dtype, -bound2, bound2)
    b2 = jax.random.uniform(k4, (1, act_dim), dtype, -bound2, bound2)
    return w1, b1, w2, b2


def _reference(x, w1, b1, w2, b2):
    """Pure-JAX reference with the same bf16-operand / f32-accumulate numerics."""
    xb, w1b, w2b = (t.astype(jnp.bfloat16) for t in (x, w1, w2))
    h = jnp.maximum(jnp.dot(xb, w1b, preferred_element_type=jnp.float32) + b1, 0.0)
    return jnp.dot(h.astype(jnp.bfloat16), w2b,
                   preferred_element_type=jnp.float32) + b2


if __name__ == "__main__":
    obs_dim, act_dim, hidden, batch = 16, 8, 64, 8

    key = jax.random.PRNGKey(0)
    k_x, k_x2, k_p = jax.random.split(key, 3)
    x = jax.random.normal(k_x, (batch, obs_dim), jnp.float32)
    w1, b1, w2, b2 = init_params(k_p, obs_dim, act_dim, hidden)
    params = prep_params(w1, b1, w2, b2)   # one-time prep, hoisted out of forward

    out = policy_network_forward(x, *params)
    out = jax.block_until_ready(out)
    assert out.shape == (batch, act_dim)

    ref = _reference(x, w1, b1, w2, b2)
    assert jnp.allclose(out, ref, atol=1e-4, rtol=1e-4)

    # Also close to the pure-f32 PyTorch-style forward (loose: bf16 operands).
    ref_f32 = jnp.maximum(x @ w1 + b1, 0.0) @ w2 + b2
    assert jnp.allclose(out, ref_f32, atol=5e-2, rtol=5e-2)

    # Exercise the batch-padding path (batch not a multiple of the sublane width).
    x2 = jax.random.normal(k_x2, (300, obs_dim), jnp.float32)
    out2 = jax.block_until_ready(policy_network_forward(x2, *params))
    assert out2.shape == (300, act_dim)
    assert jnp.allclose(out2, _reference(x2, w1, b1, w2, b2), atol=1e-4, rtol=1e-4)

    print("KERNEL_OK")
</pallas_src>

<mosaic_0001>
module attributes {stable_mosaic.version = 11 : i64} {
  func.func @mlp_kernel(%arg0: i32, %arg1: memref<8x16xf32, #tpu.memory_space<vmem>>, %arg2: memref<16x64xbf16, #tpu.memory_space<vmem>>, %arg3: memref<1x64xf32, #tpu.memory_space<vmem>>, %arg4: memref<64x8xbf16, #tpu.memory_space<vmem>>, %arg5: memref<1x8xf32, #tpu.memory_space<vmem>>, %arg6: memref<8x8xf32, #tpu.memory_space<vmem>>) attributes {dimension_semantics = [#tpu.dimension_semantics<parallel>], iteration_bounds = array<i64: 1>, scalar_prefetch = 0 : i64, scratch_operands = 0 : i64, tpu.core_type = #tpu.core_type<tc>, window_params = [{transform_indices = @transform_0, window_bounds = array<i64: 8, 16>}, {pipeline_mode = #tpu.pipeline_mode<synchronous>, transform_indices = @transform_1, window_bounds = array<i64: 16, 64>}, {pipeline_mode = #tpu.pipeline_mode<synchronous>, transform_indices = @transform_2, window_bounds = array<i64: 1, 64>}, {pipeline_mode = #tpu.pipeline_mode<synchronous>, transform_indices = @transform_3, window_bounds = array<i64: 64, 8>}, {pipeline_mode = #tpu.pipeline_mode<synchronous>, transform_indices = @transform_4, window_bounds = array<i64: 1, 8>}, {transform_indices = @transform_5, window_bounds = array<i64: 8, 8>}]} {
    %c0 = arith.constant 0 : index
    %c0_0 = arith.constant 0 : index
    %0 = vector.load %arg1[%c0, %c0_0] : memref<8x16xf32, #tpu.memory_space<vmem>>, vector<8x16xf32>
    %1 = arith.truncf %0 : vector<8x16xf32> to vector<8x16xbf16>
    %c0_1 = arith.constant 0 : index
    %c0_2 = arith.constant 0 : index
    %2 = vector.load %arg2[%c0_1, %c0_2] : memref<16x64xbf16, #tpu.memory_space<vmem>>, vector<16x64xbf16>
    %cst = arith.constant dense<0.000000e+00> : vector<8x64xf32>
    %3 = tpu.matmul %1, %2, %cst {dimension_numbers = #tpu.dot_dimension_numbers<[1], [0], [0], [1], [0, 0, 1, 1], [], []>} : vector<8x16xbf16>, vector<16x64xbf16>, vector<8x64xf32> -> vector<8x64xf32>
    %c0_3 = arith.constant 0 : index
    %c0_4 = arith.constant 0 : index
    %4 = vector.load %arg3[%c0_3, %c0_4] : memref<1x64xf32, #tpu.memory_space<vmem>>, vector<1x64xf32>
    %5 = vector.broadcast %4 : vector<1x64xf32> to vector<8x64xf32>
    %6 = arith.addf %3, %5 : vector<8x64xf32>
    %cst_5 = arith.constant 0.000000e+00 : f32
    %7 = vector.broadcast %cst_5 : f32 to vector<8x64xf32>
    %8 = arith.maximumf %6, %7 : vector<8x64xf32>
    %9 = arith.truncf %8 : vector<8x64xf32> to vector<8x64xbf16>
    %c0_6 = arith.constant 0 : index
    %c0_7 = arith.constant 0 : index
    %10 = vector.load %arg4[%c0_6, %c0_7] : memref<64x8xbf16, #tpu.memory_space<vmem>>, vector<64x8xbf16>
    %cst_8 = arith.constant dense<0.000000e+00> : vector<8x8xf32>
    %11 = tpu.matmul %9, %10, %cst_8 {dimension_numbers = #tpu.dot_dimension_numbers<[1], [0], [0], [1], [0, 0, 1, 1], [], []>} : vector<8x64xbf16>, vector<64x8xbf16>, vector<8x8xf32> -> vector<8x8xf32>
    %c0_9 = arith.constant 0 : index
    %c0_10 = arith.constant 0 : index
    %12 = vector.load %arg5[%c0_9, %c0_10] : memref<1x8xf32, #tpu.memory_space<vmem>>, vector<1x8xf32>
    %13 = vector.broadcast %12 : vector<1x8xf32> to vector<8x8xf32>
    %14 = arith.addf %11, %13 : vector<8x8xf32>
    %c0_11 = arith.constant 0 : index
    %c0_12 = arith.constant 0 : index
    %15 = vector.load %arg6[%c0_11, %c0_12] : memref<8x8xf32, #tpu.memory_space<vmem>>, vector<8x8xf32>
    tpu.vector_store %arg6[%c0_11, %c0_12], %14 {strides = array<i32>} : memref<8x8xf32, #tpu.memory_space<vmem>>, vector<8x8xf32>,
    return
  }
  func.func @transform_0(%arg0: i32) -> (i32, i32) {
    %c0_i32 = arith.constant 0 : i32
    %c0_i32_0 = arith.constant 0 : i32
    return %arg0, %c0_i32 : i32, i32
  }
  func.func @transform_1(%arg0: i32) -> (i32, i32) {
    %c0_i32 = arith.constant 0 : i32
    %c0_i32_0 = arith.constant 0 : i32
    %c0_i32_1 = arith.constant 0 : i32
    return %c0_i32, %c0_i32_0 : i32, i32
  }
  func.func @transform_2(%arg0: i32) -> (i32, i32) {
    %c0_i32 = arith.constant 0 : i32
    %c0_i32_0 = arith.constant 0 : i32
    %c0_i32_1 = arith.constant 0 : i32
    return %c0_i32, %c0_i32_0 : i32, i32
  }
  func.func @transform_3(%arg0: i32) -> (i32, i32) {
    %c0_i32 = arith.constant 0 : i32
    %c0_i32_0 = arith.constant 0 : i32
    %c0_i32_1 = arith.constant 0 : i32
    return %c0_i32, %c0_i32_0 : i32, i32
  }
  func.func @transform_4(%arg0: i32) -> (i32, i32) {
    %c0_i32 = arith.constant 0 : i32
    %c0_i32_0 = arith.constant 0 : i32
    %c0_i32_1 = arith.constant 0 : i32
    return %c0_i32, %c0_i32_0 : i32, i32
  }
  func.func @transform_5(%arg0: i32) -> (i32, i32) {
    %c0_i32 = arith.constant 0 : i32
    %c0_i32_0 = arith.constant 0 : i32
    return %arg0, %c0_i32 : i32, i32
  }
}

</mosaic_0001>

<bundles_post_ra>
// kernel: tpu_custom_call.1
= control target key start
LH: loop header
LB: loop body
LE: loop exit
PB: predicated region body
PF: predicated region fallthrough
CT: control target
= control target key end

     0   :  { %v250_v1 = vmov 0.0   ;;  %vm39_vm0 = vcmask 130048   ;;  %vm251_vm1 = vmmov 0   ;;  %s319_s0 = inlined_call_operand.vmem [shape: f32[8,16], index: 0, kind: input, shape index: {}]   ;;  %s320_s1 = inlined_call_operand.vmem [shape: bf16[16,64], index: 1, kind: input, shape index: {}]   ;;  %s321_s2 = inlined_call_operand.vmem [shape: f32[1,64], index: 2, kind: input, shape index: {}]   ;;  %s322_s3 = inlined_call_operand.vmem [shape: bf16[64,8], index: 3, kind: input, shape index: {}]   ;;  %s323_s4 = inlined_call_operand.vmem [shape: f32[1,8], index: 4, kind: input, shape index: {}]   ;;  %s324_s5 = inlined_call_operand.hbm [shape: f32[8,8], index: 5, kind: output, shape index: {}]  }
   0x1   :  { %v221_v0 = vld [vmem:[%s320_s1] sm:$0xff]   ;;  %200 = vmatprep.subr.bf16.mxu0 %v250_v1  ;;  %206 = vmatprep.subr.bf16.mxu1 %v250_v1  ;;  %v223_v5 = vld [vmem:[%s322_s3 + $0x8] sm:$0xff]  }
   0x2   :  { %v22_v2 = vld [vmem:[%s319_s0] sm:$0xff]  ;;  %201 = vmatpush3.bf16.msra.mxu0 %v221_v0  ;;  %202 = vmatprep.mubr.msk.bf16.mxu0 %vm251_vm1, %v250_v1 }
   0x3   :  { %v222_v3 = vld [vmem:[%s322_s3] sm:$0xff]   ;;  %v23_v4 = vpack.c.bf16 %v22_v2, %v22_v2  ;;  %214 = vmatprep.mubr.msk.bf16.mxu1 %vm251_vm1, %v250_v1 }
   0x4   :  { %207 = vmatpush3.bf16.msra.mxu1 %v222_v3 }
   0x5   :  { %208 = vmatprep.subr.bf16.mxu1 %v250_v1  ;;  %203 = vmatmul.mubr.msk.bf16.vlgmr.msra.gmra.mrb[0].mxu0 %vm39_vm0, %v23_v4 }
   0x6   :  { %10 = vsyncpa [#allocation3], 0  ;;  %v224_v6 = vld [vmem:[%s322_s3 + $0x10] sm:$0xff]   ;;  %v225_v7 = vld [vmem:[%s322_s3 + $0x18] sm:$0xff]   ;;  %vm124_vm2 = vcmask 523264   ;;  %s252_s7 = smov [#allocation2]  }
   0x7   :  { %v184_v8 = vld [vmem:[%s321_s2] ss:$0 sm:$0xff]  ;;  %s176_s3 = sshll.u32 %s252_s7, 4  ;;  %vm168_vm3 = vcmask 64512   ;;  %s177_s3 = int_to_ptr.vmem [resolvable:$true] %s176_s3 }
   0x8   :  { %209 = vmatpush3.bf16.msra.mxu1 %v223_v5  ;;  %v187_v16 = vld [vmem:[%s323_s4] ss:$0 sm:$0xff]  ;;  %s226_s2 = scalar_lea.vmem %s177_s3, 128  ;;  %p231_p1 = scmp.lt.s32.totalorder %s177_s3, %s177_s3 }
   0x9   :  { %210 = vmatprep.subr.bf16.mxu1 %v250_v1  ;;  %p227_p0 = scmp.ne.s32.totalorder %s177_s3, %s226_s2  ;;  %p232_p2 = scmp.lt.s32.totalorder %s226_s2, %s226_s2 }
   0xb   :  { %p233_p3 = por %p232_p2, %p231_p1 }
   0xc   :  { %211 = vmatpush3.bf16.msra.mxu1 %v224_v6 }
   0xd   :  { %212 = vmatprep.subr.bf16.mxu1 %v250_v1  ;;  %p234_p4 = pnand %p233_p3, %p227_p0 }
  0x10   :  { %213 = vmatpush3.bf16.msra.mxu1 %v225_v7 }
  0xd8   :  { %v77_v9 = vpop.f32.mrb[0].mxu0 }
  0xd9   :  { %v78_v10 = vadd.f32 %v184_v8, %v77_v9  ;;  %v204_v11 = vpop.f32.mrb[1].mxu0 }
  0xda   :  { %v80_v12 = vpop.f32.mrb[2].mxu0 }
  0xdb   :  { %v83_v13 = vmax.f32 %v78_v10, 0.0  ;;  %v205_v14 = vpop.f32.mrb[3].mxu0 }
  0xdd   :  { %v84_v15 = vpack.c.bf16 %v83_v13, %v83_v13 }
  0xdf   :  { %215 = vmatmul.mubr.msk.bf16.vlgmr.msra.gmra.mrb[0].mxu1 %vm124_vm2, %v84_v15 }
 0x1b2   :  { %v162_v17 = vpop.f32.mrb[0].mxu1 }
 0x1b3   :  { %v163_v18 = vadd.f32 %v187_v16, %v162_v17  ;;  %v216_v19 = vpop.f32.mrb[1].mxu1 }
 0x1b4   :  { %v165_v20 = vpop.f32.mrb[2].mxu1 }
 0x1b5   :  { %v217_v21 = vpop.f32.mrb[3].mxu1  ;;  %169 = vst.msk [vmem:[#allocation2] sm:$0xff] %vm168_vm3, %v163_v18 }
 0x1b6   :  { %237 = shalt.err (!%p234_p4)
}
 0x1b7   :  { %s238_s4 = scalar_lea.hbm %s324_s5, 128 }
 0x1b8   :  { %p239_p5 = scmp.ne.s32.totalorder %s324_s5, %s238_s4  ;;  %p242_p6 = scmp.lt.u32.totalorder %s238_s4, %s324_s5 }
 0x1ba   :  { %p244_p7 = pnand %p242_p6, %p239_p5 }
 0x1bc   :  { %247 = shalt.err (!%p244_p7)
}
 0x1bd   :  { %179 = dma.vmem_to_hbm [thread:$0]  %s177_s3, 128, %s324_s5, [#allocation3]  }
 0x1be   :  { %248 = dma.done.wait [#allocation3], 128  }
 0x1bf   :  { %249 = vsyncadd [#allocation3], 4294967168 }
 0x1c0   :  { %183 = vsyncpa [#allocation3], 1 }

</bundles_post_ra>
